<compile_context>
chip_gen: v7x
topology: tpu7x:2x2x1
jax: 0.10.0
libtpu: 0.0.40
codegen_flags: <defaults>
</compile_context>

<pallas_src>
import functools
import math

import jax
import jax.numpy as jnp
from jax.experimental import pallas as pl
from jax.experimental.pallas import tpu as pltpu


# ----------------------------------------------------------------------------
# Helpers
# ----------------------------------------------------------------------------
def _layernorm(x, g, b, eps):
    mu = jnp.mean(x, axis=-1, keepdims=True)
    var = jnp.mean((x - mu) ** 2, axis=-1, keepdims=True)
    return (x - mu) * jax.lax.rsqrt(var + eps) * g + b


# ----------------------------------------------------------------------------
# Pallas kernel: NODEAttention forward for a tile of batch elements.
# ----------------------------------------------------------------------------
def node_attention_kernel(
    node_ref, edge_ref, mask_ref,          # per-tile activations (bf16) / mask (int8)
    w_ref, bias_ref, vecs_ref,             # packed parameters
    out_ref,                               # output (f32)
    kv_ref, attn_ref,                      # VMEM scratch
    *, num_heads, head_dim, eps=1e-5,
):
    f32, bf16 = jnp.float32, jnp.bfloat16
    d_model = num_heads * head_dim
    bt, ln, _ = node_ref.shape
    le = edge_ref.shape[1]
    scaling = 1.0 / math.sqrt(head_dim)
    neg = jnp.float32(-1e30)   # finite "minus infinity": no NaN for fully-masked rows

    # ---- packed parameter views (static, 128-aligned lane slices) ------------------
    w1 = w_ref[:, 0 * d_model:3 * d_model]          # (D, 3D)  in_proj_weight1
    w2 = w_ref[:, 3 * d_model:5 * d_model]          # (D, 2D)  in_proj_weight2
    l1w = w_ref[:, 5 * d_model:6 * d_model]         # (D, D)   linear1_node
    l2w = w_ref[:, 6 * d_model:7 * d_model]         # (D, D)   linear2_node
    b1 = bias_ref[:, :3 * d_model]                  # (1, 3D)
    b2 = bias_ref[:, 3 * d_model:]                  # (1, 2D)
    l1b = vecs_ref[0:1, :]
    l2b = vecs_ref[1:2, :]
    g1 = vecs_ref[2:3, :]
    be1 = vecs_ref[3:4, :]
    g2 = vecs_ref[4:5, :]
    be2 = vecs_ref[5:6, :]

    # ---- fused in-projections (bf16 MXU operands, f32 accumulation) ----------------
    node_f32 = node_ref[...].astype(f32)                       # residual stream (f32)
    node2d = node_f32.reshape(bt * ln, d_model).astype(bf16)
    edge2d = edge_ref[...].astype(f32).reshape(bt * le, d_model).astype(bf16)

    proj1 = jnp.dot(node2d, w1, preferred_element_type=f32) + b1   # (bt*ln, 3D)
    proj2 = jnp.dot(edge2d, w2, preferred_element_type=f32) + b2   # (bt*le, 2D)

    q = proj1[:, :d_model].reshape(bt, ln, d_model)                # (bt, ln, D) f32

    # Merge node/edge K,V along the key axis with two stores into one scratch
    # (layout along lanes: [K | V]); no jnp.concatenate => no relayout copy.
    kv_ref[:, :ln, :] = proj1[:, d_model:].reshape(bt, ln, 2 * d_model)
    kv_ref[:, ln:, :] = proj2.reshape(bt, le, 2 * d_model)

    k_all = kv_ref[:, :, :d_model]                                 # (bt, L, D) f32
    v_all = kv_ref[:, :, d_model:]                                 # (bt, L, D) f32

    mask = mask_ref[...] != 0                                      # (bt, ln, L) bool

    # ---- attention over the merged key axis -----------------------------------------
    # TODO(synk): for num_heads > 1 with head_dim < 128 the per-head lane slices /
    # stores are not 128-aligned (relayout copies); only num_heads == 1 is exercised.
    for h in range(num_heads):                                     # static loop
        sl = slice(h * head_dim, (h + 1) * head_dim)
        s = jnp.einsum("bqd,bkd->bqk",
                       q[:, :, sl].astype(bf16), k_all[:, :, sl].astype(bf16),
                       preferred_element_type=f32) * scaling       # (bt, ln, L)
        s = jnp.where(mask, neg, s)
        m = jnp.max(s, axis=-1, keepdims=True)
        p = jnp.exp(s - m)
        denom = jnp.sum(p, axis=-1, keepdims=True)
        inv = pl.reciprocal(denom, approx=True)                    # EUP slot, ~free
        ctx = jnp.einsum("bqk,bkd->bqd",
                         p.astype(bf16), v_all[:, :, sl].astype(bf16),
                         preferred_element_type=f32) * inv
        attn_ref[:, :, sl] = ctx                                   # no concatenate

    # ---- residual + LayerNorm 1 (f32) ------------------------------------------------
    x = _layernorm(node_f32 + attn_ref[...], g1, be1, eps)         # (bt, ln, D)
    x2 = x.reshape(bt * ln, d_model)

    # ---- FFN (relu; dropout = identity) + residual + LayerNorm 2 ----------------------
    h1 = jnp.dot(x2.astype(bf16), l1w, preferred_element_type=f32) + l1b
    h1 = jnp.maximum(h1, 0.0)
    y = jnp.dot(h1.astype(bf16), l2w, preferred_element_type=f32) + l2b
    x2 = _layernorm(x2 + y, g2, be2, eps)

    out_ref[...] = x2.reshape(bt, ln, d_model).astype(out_ref.dtype)


# ----------------------------------------------------------------------------
# Tile picking / VMEM budgeting
# ----------------------------------------------------------------------------
def _largest_divisor_le(n, ub):
    ub = max(1, min(n, ub))
    for d in range(ub, 0, -1):
        if n % d == 0:
            return d
    return 1


def _vmem_estimate_bytes(bt, ln, le, d_model):
    """Rough per-step VMEM need: double-buffered pipeline blocks + scratch +
    a generous allowance for in-kernel intermediates."""
    L = ln + le
    f4, b2 = 4, 2
    blocks = (bt * ln * d_model * b2            # node tile (bf16)
              + bt * le * d_model * b2          # edge tile (bf16)
              + bt * ln * L * 1                 # mask tile (int8)
              + bt * ln * d_model * f4          # output tile (f32)
              + d_model * 7 * d_model * b2      # packed weights (bf16)
              + (5 * d_model + 6 * d_model) * f4)
    scratch = bt * L * 2 * d_model * f4 + bt * ln * d_model * f4
    inter = (bt * ln * 5 * d_model + bt * le * 2 * d_model
             + 3 * bt * ln * L + 4 * bt * ln * d_model) * f4
    return 2 * blocks + scratch + inter


def _pick_batch_tile(bsz, ln, le, d_model, target_rows=1024,
                     vmem_budget=40 * 1024 * 1024):
    """Largest divisor of bsz with b_tile*node_len <= target_rows and a VMEM
    footprint under budget.  No forced grid >= 2: that only hurts the single-
    TensorCore v5e/v6e, and megacore sharding applies whenever the grid is
    naturally > 1."""
    cap = max(1, target_rows // max(ln, 1))
    bt = _largest_divisor_le(bsz, cap)
    while bt > 1 and _vmem_estimate_bytes(bt, ln, le, d_model) > vmem_budget:
        bt = _largest_divisor_le(bsz, bt - 1)
    return bt


# ----------------------------------------------------------------------------
# Wrapper
# ----------------------------------------------------------------------------
def node_attention_forward(node_x, edge_x, node_mask, params, *, num_heads=1):
    bsz, node_len, d_model = node_x.shape
    edge_len = edge_x.shape[1]
    head_dim = d_model // num_heads
    assert head_dim * num_heads == d_model

    b_tile = _pick_batch_tile(bsz, node_len, edge_len, d_model)
    grid = (bsz // b_tile,)

    f32, bf16 = jnp.float32, jnp.bfloat16

    # bf16 activations on the wire (halves HBM<->VMEM DMA); f32 is restored
    # inside the kernel.  Output stays f32 here (consumer = f32 reference);
    # a bf16 out_shape is a one-line change if the consumer tolerates it.
    node_bf = node_x.astype(bf16)
    edge_bf = edge_x.astype(bf16)
    mask_i8 = node_mask.astype(jnp.int8)          # single merged (ln, ln+le) block

    # Pack parameters: 4 weights -> one (D, 7D) bf16 block, 2 projection
    # biases -> one (1, 5D) block, 6 (1, D) vectors -> one (6, D) block.
    w_all = jnp.concatenate(
        [params["w1"], params["w2"], params["l1w"], params["l2w"]], axis=1
    ).astype(bf16)                                                   # (D, 7D)
    bias_all = jnp.concatenate([params["b1"], params["b2"]], axis=1).astype(f32)
    vecs = jnp.concatenate(
        [params["l1b"], params["l2b"], params["g1"], params["be1"],
         params["g2"], params["be2"]], axis=0).astype(f32)           # (6, D)

    est = _vmem_estimate_bytes(b_tile, node_len, edge_len, d_model)
    vmem_limit = int(min(48 * 1024 * 1024, max(16 * 1024 * 1024, 2 * est)))

    kernel = functools.partial(node_attention_kernel,
                               num_heads=num_heads, head_dim=head_dim)

    def batch3(shape):
        return pl.BlockSpec(shape, lambda b: (b, 0, 0))

    def const2(shape):
        return pl.BlockSpec(shape, lambda b: (0, 0))

    return pl.pallas_call(
        kernel,
        out_shape=jax.ShapeDtypeStruct((bsz, node_len, d_model), f32),
        grid=grid,
        in_specs=[
            batch3((b_tile, node_len, d_model)),               # node_x (bf16)
            batch3((b_tile, edge_len, d_model)),               # edge_x (bf16)
            batch3((b_tile, node_len, node_len + edge_len)),   # mask (int8, merged)
            const2((d_model, 7 * d_model)),                    # packed weights (bf16)
            const2((1, 5 * d_model)),                          # packed proj biases
            const2((6, d_model)),                              # packed LN/FFN vectors
        ],
        out_specs=batch3((b_tile, node_len, d_model)),
        scratch_shapes=[
            pltpu.VMEM((b_tile, node_len + edge_len, 2 * d_model), f32),  # merged [K|V]
            pltpu.VMEM((b_tile, node_len, d_model), f32),                 # attn output
        ],
        compiler_params=pltpu.CompilerParams(
            dimension_semantics=("parallel",),
            vmem_limit_bytes=vmem_limit,
        ),
    )(node_bf, edge_bf, mask_i8, w_all, bias_all, vecs)


# ----------------------------------------------------------------------------
# Pure-JAX reference with the SAME precision policy (bf16 activations /
# matmul operands, f32 accumulation, softmax and LayerNorm) — same math as
# the PyTorch module in eval mode.
# ----------------------------------------------------------------------------
def reference_forward(node_x, edge_x, node_mask, params, *, num_heads=1, eps=1e-5):
    f32, bf16 = jnp.float32, jnp.bfloat16
    bsz, node_len, d_model = node_x.shape
    head_dim = d_model // num_heads
    scaling = 1.0 / math.sqrt(head_dim)

    node_f32 = node_x.astype(bf16).astype(f32)      # matches wrapper's bf16 wire format
    edge_f32 = edge_x.astype(bf16).astype(f32)

    w1 = params["w1"].astype(bf16)
    w2 = params["w2"].astype(bf16)
    l1w = params["l1w"].astype(bf16)
    l2w = params["l2w"].astype(bf16)

    proj1 = jnp.dot(node_f32.astype(bf16), w1, preferred_element_type=f32) + params["b1"]
    proj2 = jnp.dot(edge_f32.astype(bf16), w2, preferred_element_type=f32) + params["b2"]
    q, k_n, v_n = jnp.split(proj1, 3, axis=-1)
    k_e, v_e = jnp.split(proj2, 2, axis=-1)
    k = jnp.concatenate([k_n, k_e], axis=1)
    v = jnp.concatenate([v_n, v_e], axis=1)

    ctxs = []
    for h in range(num_heads):
        sl = slice(h * head_dim, (h + 1) * head_dim)
        s = jnp.einsum("bqd,bkd->bqk", q[..., sl].astype(bf16), k[..., sl].astype(bf16),
                       preferred_element_type=f32) * scaling
        s = jnp.where(node_mask, -1e30, s)
        m = s.max(-1, keepdims=True)
        p = jnp.exp(s - m)
        ctx = jnp.einsum("bqk,bkd->bqd", p.astype(bf16), v[..., sl].astype(bf16),
                         preferred_element_type=f32) / p.sum(-1, keepdims=True)
        ctxs.append(ctx)
    attn = ctxs[0] if num_heads == 1 else jnp.concatenate(ctxs, axis=-1)

    x = _layernorm(node_f32 + attn, params["g1"], params["be1"], eps)
    h1 = jnp.maximum(
        jnp.dot(x.astype(bf16), l1w, preferred_element_type=f32) + params["l1b"], 0.0)
    y = jnp.dot(h1.astype(bf16), l2w, preferred_element_type=f32) + params["l2b"]
    return _layernorm(x + y, params["g2"], params["be2"], eps)


# ----------------------------------------------------------------------------
def make_params(key, d_model):
    ks = jax.random.split(key, 8)

    def xavier(k, fan_in, fan_out):
        limit = (6.0 / (fan_in + fan_out)) ** 0.5
        return jax.random.uniform(k, (fan_in, fan_out), jnp.float32, -limit, limit)

    def linear_init(k, fan_in, fan_out):
        bound = 1.0 / (fan_in ** 0.5)
        kw, kb = jax.random.split(k)
        w = jax.random.uniform(kw, (fan_in, fan_out), jnp.float32, -bound, bound)
        b = jax.random.uniform(kb, (1, fan_out), jnp.float32, -bound, bound)
        return w, b

    l1w, l1b = linear_init(ks[2], d_model, d_model)
    l2w, l2b = linear_init(ks[3], d_model, d_model)

    return dict(
        w1=xavier(ks[0], d_model, 3 * d_model),
        b1=jnp.zeros((1, 3 * d_model), jnp.float32),
        w2=xavier(ks[1], d_model, 2 * d_model),
        b2=jnp.zeros((1, 2 * d_model), jnp.float32),
        l1w=l1w, l1b=l1b, l2w=l2w, l2b=l2b,
        g1=jnp.ones((1, d_model), jnp.float32),
        be1=jnp.zeros((1, d_model), jnp.float32),
        g2=jnp.ones((1, d_model), jnp.float32),
        be2=jnp.zeros((1, d_model), jnp.float32),
    )


if __name__ == "__main__":
    # TODO(synk): dropout is implemented as identity (eval mode); training-mode
    # stochastic dropout is not implemented.
    bsz, node_len, edge_len, d_model, num_heads = 2, 8, 8, 128, 1

    key = jax.random.PRNGKey(0)
    k_node, k_edge, k_mask, k_par = jax.random.split(key, 4)

    node_x = jax.random.normal(k_node, (bsz, node_len, d_model), jnp.float32)
    edge_x = jax.random.normal(k_edge, (bsz, edge_len, d_model), jnp.float32)
    node_mask = jax.random.bernoulli(
        k_mask, 0.2, (bsz, node_len, node_len + edge_len)
    )
    # Note: masked scores use -1e30 (not -inf), so a fully-masked row would give
    # uniform attention instead of the NaN torch would produce.

    params = make_params(k_par, d_model)

    out = node_attention_forward(node_x, edge_x, node_mask, params,
                                 num_heads=num_heads)
    out = jax.block_until_ready(out)

    ref = reference_forward(node_x, edge_x, node_mask, params,
                            num_heads=num_heads)
    ref = jax.block_until_ready(ref)

    assert out.shape == (bsz, node_len, d_model)
    max_err = float(jnp.max(jnp.abs(out - ref)))
    assert jnp.allclose(out, ref, rtol=2e-2, atol=2e-2), max_err
    print("KERNEL_OK")
</pallas_src>

<mosaic_0001>
module attributes {stable_mosaic.version = 11 : i64} {
  func.func @node_attention_kernel(%arg0: i32, %arg1: memref<2x8x128xbf16, #tpu.memory_space<vmem>>, %arg2: memref<2x8x128xbf16, #tpu.memory_space<vmem>>, %arg3: memref<2x8x16xi8, #tpu.memory_space<vmem>>, %arg4: memref<128x896xbf16, #tpu.memory_space<vmem>>, %arg5: memref<1x640xf32, #tpu.memory_space<vmem>>, %arg6: memref<6x128xf32, #tpu.memory_space<vmem>>, %arg7: memref<2x8x128xf32, #tpu.memory_space<vmem>>, %arg8: memref<2x16x256xf32, #tpu.memory_space<vmem>>, %arg9: memref<2x8x128xf32, #tpu.memory_space<vmem>>) attributes {dimension_semantics = [#tpu.dimension_semantics<parallel>], iteration_bounds = array<i64: 1>, scalar_prefetch = 0 : i64, scratch_operands = 2 : i64, tpu.core_type = #tpu.core_type<tc>, window_params = [{transform_indices = @transform_0, window_bounds = array<i64: 2, 8, 128>}, {transform_indices = @transform_1, window_bounds = array<i64: 2, 8, 128>}, {transform_indices = @transform_2, window_bounds = array<i64: 2, 8, 16>}, {pipeline_mode = #tpu.pipeline_mode<synchronous>, transform_indices = @transform_3, window_bounds = array<i64: 128, 896>}, {pipeline_mode = #tpu.pipeline_mode<synchronous>, transform_indices = @transform_4, window_bounds = array<i64: 1, 640>}, {pipeline_mode = #tpu.pipeline_mode<synchronous>, transform_indices = @transform_5, window_bounds = array<i64: 6, 128>}, {transform_indices = @transform_6, window_bounds = array<i64: 2, 8, 128>}]} {
    %c0 = arith.constant 0 : index
    %c0_0 = arith.constant 0 : index
    %0 = vector.load %arg4[%c0, %c0_0] : memref<128x896xbf16, #tpu.memory_space<vmem>>, vector<128x384xbf16>
    %c0_1 = arith.constant 0 : index
    %c384 = arith.constant 384 : index
    %1 = vector.load %arg4[%c0_1, %c384] : memref<128x896xbf16, #tpu.memory_space<vmem>>, vector<128x256xbf16>
    %c0_2 = arith.constant 0 : index
    %c640 = arith.constant 640 : index
    %2 = vector.load %arg4[%c0_2, %c640] : memref<128x896xbf16, #tpu.memory_space<vmem>>, vector<128x128xbf16>
    %c0_3 = arith.constant 0 : index
    %c768 = arith.constant 768 : index
    %3 = vector.load %arg4[%c0_3, %c768] : memref<128x896xbf16, #tpu.memory_space<vmem>>, vector<128x128xbf16>
    %c0_4 = arith.constant 0 : index
    %c0_5 = arith.constant 0 : index
    %4 = vector.load %arg5[%c0_4, %c0_5] : memref<1x640xf32, #tpu.memory_space<vmem>>, vector<1x384xf32>
    %c0_6 = arith.constant 0 : index
    %c384_7 = arith.constant 384 : index
    %5 = vector.load %arg5[%c0_6, %c384_7] : memref<1x640xf32, #tpu.memory_space<vmem>>, vector<1x256xf32>
    %c0_8 = arith.constant 0 : index
    %c0_9 = arith.constant 0 : index
    %6 = vector.load %arg6[%c0_8, %c0_9] : memref<6x128xf32, #tpu.memory_space<vmem>>, vector<1x128xf32>
    %c1 = arith.constant 1 : index
    %c0_10 = arith.constant 0 : index
    %7 = vector.load %arg6[%c1, %c0_10] : memref<6x128xf32, #tpu.memory_space<vmem>>, vector<1x128xf32>
    %c2 = arith.constant 2 : index
    %c0_11 = arith.constant 0 : index
    %8 = vector.load %arg6[%c2, %c0_11] : memref<6x128xf32, #tpu.memory_space<vmem>>, vector<1x128xf32>
    %c3 = arith.constant 3 : index
    %c0_12 = arith.constant 0 : index
    %9 = vector.load %arg6[%c3, %c0_12] : memref<6x128xf32, #tpu.memory_space<vmem>>, vector<1x128xf32>
    %c4 = arith.constant 4 : index
    %c0_13 = arith.constant 0 : index
    %10 = vector.load %arg6[%c4, %c0_13] : memref<6x128xf32, #tpu.memory_space<vmem>>, vector<1x128xf32>
    %c5 = arith.constant 5 : index
    %c0_14 = arith.constant 0 : index
    %11 = vector.load %arg6[%c5, %c0_14] : memref<6x128xf32, #tpu.memory_space<vmem>>, vector<1x128xf32>
    %c0_15 = arith.constant 0 : index
    %c0_16 = arith.constant 0 : index
    %c0_17 = arith.constant 0 : index
    %12 = vector.load %arg1[%c0_15, %c0_16, %c0_17] : memref<2x8x128xbf16, #tpu.memory_space<vmem>>, vector<2x8x128xbf16>
    %13 = arith.extf %12 : vector<2x8x128xbf16> to vector<2x8x128xf32>
    %14 = vector.shape_cast %13 : vector<2x8x128xf32> to vector<16x128xf32>
    %15 = arith.truncf %14 : vector<16x128xf32> to vector<16x128xbf16>
    %c0_18 = arith.constant 0 : index
    %c0_19 = arith.constant 0 : index
    %c0_20 = arith.constant 0 : index
    %16 = vector.load %arg2[%c0_18, %c0_19, %c0_20] : memref<2x8x128xbf16, #tpu.memory_space<vmem>>, vector<2x8x128xbf16>
    %17 = arith.extf %16 : vector<2x8x128xbf16> to vector<2x8x128xf32>
    %18 = vector.shape_cast %17 : vector<2x8x128xf32> to vector<16x128xf32>
    %19 = arith.truncf %18 : vector<16x128xf32> to vector<16x128xbf16>
    %cst = arith.constant dense<0.000000e+00> : vector<16x384xf32>
    %20 = tpu.matmul %15, %0, %cst {dimension_numbers = #tpu.dot_dimension_numbers<[1], [0], [0], [1], [0, 0, 1, 1], [], []>} : vector<16x128xbf16>, vector<128x384xbf16>, vector<16x384xf32> -> vector<16x384xf32>
    %21 = vector.broadcast %4 : vector<1x384xf32> to vector<16x384xf32>
    %22 = arith.addf %20, %21 : vector<16x384xf32>
    %cst_21 = arith.constant dense<0.000000e+00> : vector<16x256xf32>
    %23 = tpu.matmul %19, %1, %cst_21 {dimension_numbers = #tpu.dot_dimension_numbers<[1], [0], [0], [1], [0, 0, 1, 1], [], []>} : vector<16x128xbf16>, vector<128x256xbf16>, vector<16x256xf32> -> vector<16x256xf32>
    %24 = vector.broadcast %5 : vector<1x256xf32> to vector<16x256xf32>
    %25 = arith.addf %23, %24 : vector<16x256xf32>
    %26 = vector.extract_strided_slice %22 {offsets = [0, 0], sizes = [16, 128], strides = [1, 1]} : vector<16x384xf32> to vector<16x128xf32>
    %27 = vector.shape_cast %26 : vector<16x128xf32> to vector<2x8x128xf32>
    %28 = vector.extract_strided_slice %22 {offsets = [0, 128], sizes = [16, 256], strides = [1, 1]} : vector<16x384xf32> to vector<16x256xf32>
    %29 = vector.shape_cast %28 : vector<16x256xf32> to vector<2x8x256xf32>
    %c0_22 = arith.constant 0 : index
    %c0_23 = arith.constant 0 : index
    %c0_24 = arith.constant 0 : index
    %30 = vector.load %arg8[%c0_22, %c0_23, %c0_24] : memref<2x16x256xf32, #tpu.memory_space<vmem>>, vector<2x8x256xf32>
    tpu.vector_store %arg8[%c0_22, %c0_23, %c0_24], %29 {strides = array<i32>} : memref<2x16x256xf32, #tpu.memory_space<vmem>>, vector<2x8x256xf32>,
    %31 = vector.shape_cast %25 : vector<16x256xf32> to vector<2x8x256xf32>
    %c0_25 = arith.constant 0 : index
    %c8 = arith.constant 8 : index
    %c0_26 = arith.constant 0 : index
    %32 = vector.load %arg8[%c0_25, %c8, %c0_26] : memref<2x16x256xf32, #tpu.memory_space<vmem>>, vector<2x8x256xf32>
    tpu.vector_store %arg8[%c0_25, %c8, %c0_26], %31 {strides = array<i32>} : memref<2x16x256xf32, #tpu.memory_space<vmem>>, vector<2x8x256xf32>,
    %c0_27 = arith.constant 0 : index
    %c0_28 = arith.constant 0 : index
    %c0_29 = arith.constant 0 : index
    %33 = vector.load %arg8[%c0_27, %c0_28, %c0_29] : memref<2x16x256xf32, #tpu.memory_space<vmem>>, vector<2x16x128xf32>
    %c0_30 = arith.constant 0 : index
    %c0_31 = arith.constant 0 : index
    %c128 = arith.constant 128 : index
    %34 = vector.load %arg8[%c0_30, %c0_31, %c128] : memref<2x16x256xf32, #tpu.memory_space<vmem>>, vector<2x16x128xf32>
    %c0_32 = arith.constant 0 : index
    %c0_33 = arith.constant 0 : index
    %c0_34 = arith.constant 0 : index
    %35 = vector.load %arg3[%c0_32, %c0_33, %c0_34] : memref<2x8x16xi8, #tpu.memory_space<vmem>>, vector<2x8x16xi8>
    %c0_i8 = arith.constant 0 : i8
    %36 = vector.broadcast %c0_i8 : i8 to vector<2x8x16xi8>
    %37 = arith.cmpi ne, %35, %36 : vector<2x8x16xi8>
    %38 = arith.truncf %27 : vector<2x8x128xf32> to vector<2x8x128xbf16>
    %39 = arith.truncf %33 : vector<2x16x128xf32> to vector<2x16x128xbf16>
    "tpu.trace_start"() <{level = 10 : i32, message = "bqd,bkd->bqk"}> : () -> ()
    %cst_35 = arith.constant dense<0.000000e+00> : vector<2x8x16xf32>
    %40 = tpu.matmul %38, %39, %cst_35 {dimension_numbers = #tpu.dot_dimension_numbers<[2], [2], [1], [1], [0, 0, 0, 1, 1, 1], [0], [0]>} : vector<2x8x128xbf16>, vector<2x16x128xbf16>, vector<2x8x16xf32> -> vector<2x8x16xf32>
    "tpu.trace_stop"() : () -> ()
    %cst_36 = arith.constant 0.0883883461 : f32
    %41 = vector.broadcast %cst_36 : f32 to vector<2x8x16xf32>
    %42 = arith.mulf %40, %41 : vector<2x8x16xf32>
    %cst_37 = arith.constant -1.000000e+30 : f32
    %43 = vector.broadcast %cst_37 : f32 to vector<2x8x16xf32>
    %44 = arith.select %37, %43, %42 : vector<2x8x16xi1>, vector<2x8x16xf32>
    %cst_38 = arith.constant dense<0xFF800000> : vector<2x8xf32>
    %45 = vector.multi_reduction <maximumf>, %44, %cst_38 [2] : vector<2x8x16xf32> to vector<2x8xf32>
    %46 = vector.shape_cast %45 : vector<2x8xf32> to vector<2x8x1xf32>
    %47 = vector.broadcast %46 : vector<2x8x1xf32> to vector<2x8x16xf32>
    %48 = arith.subf %44, %47 : vector<2x8x16xf32>
    %49 = math.exp %48 : vector<2x8x16xf32>
    %cst_39 = arith.constant dense<0.000000e+00> : vector<2x8xf32>
    %50 = vector.multi_reduction <add>, %49, %cst_39 [2] : vector<2x8x16xf32> to vector<2x8xf32>
    %51 = vector.shape_cast %50 : vector<2x8xf32> to vector<2x8x1xf32>
    %52 = tpu.reciprocal %51 {approx = true} : vector<2x8x1xf32> -> vector<2x8x1xf32>
    %53 = arith.truncf %49 : vector<2x8x16xf32> to vector<2x8x16xbf16>
    %54 = arith.truncf %34 : vector<2x16x128xf32> to vector<2x16x128xbf16>
    "tpu.trace_start"() <{level = 10 : i32, message = "bqk,bkd->bqd"}> : () -> ()
    %cst_40 = arith.constant dense<0.000000e+00> : vector<2x8x128xf32>
    %55 = tpu.matmul %53, %54, %cst_40 {dimension_numbers = #tpu.dot_dimension_numbers<[2], [1], [1], [2], [0, 0, 0, 1, 1, 2], [0], [0]>} : vector<2x8x16xbf16>, vector<2x16x128xbf16>, vector<2x8x128xf32> -> vector<2x8x128xf32>
    "tpu.trace_stop"() : () -> ()
    %56 = vector.broadcast %52 : vector<2x8x1xf32> to vector<2x8x128xf32>
    %57 = arith.mulf %55, %56 : vector<2x8x128xf32>
    %c0_41 = arith.constant 0 : index
    %c0_42 = arith.constant 0 : index
    %c0_43 = arith.constant 0 : index
    %58 = vector.load %arg9[%c0_41, %c0_42, %c0_43] : memref<2x8x128xf32, #tpu.memory_space<vmem>>, vector<2x8x128xf32>
    tpu.vector_store %arg9[%c0_41, %c0_42, %c0_43], %57 {strides = array<i32>} : memref<2x8x128xf32, #tpu.memory_space<vmem>>, vector<2x8x128xf32>,
    %c0_44 = arith.constant 0 : index
    %c0_45 = arith.constant 0 : index
    %c0_46 = arith.constant 0 : index
    %59 = vector.load %arg9[%c0_44, %c0_45, %c0_46] : memref<2x8x128xf32, #tpu.memory_space<vmem>>, vector<2x8x128xf32>
    %60 = arith.addf %13, %59 : vector<2x8x128xf32>
    %cst_47 = arith.constant dense<0.000000e+00> : vector<2x8xf32>
    %61 = vector.multi_reduction <add>, %60, %cst_47 [2] : vector<2x8x128xf32> to vector<2x8xf32>
    %62 = vector.shape_cast %61 : vector<2x8xf32> to vector<2x8x1xf32>
    %cst_48 = arith.constant 1.280000e+02 : f32
    %63 = vector.broadcast %cst_48 : f32 to vector<2x8x1xf32>
    %64 = arith.divf %62, %63 : vector<2x8x1xf32>
    %65 = vector.broadcast %64 : vector<2x8x1xf32> to vector<2x8x128xf32>
    %66 = arith.subf %60, %65 : vector<2x8x128xf32>
    %67 = arith.mulf %66, %66 : vector<2x8x128xf32>
    %cst_49 = arith.constant dense<0.000000e+00> : vector<2x8xf32>
    %68 = vector.multi_reduction <add>, %67, %cst_49 [2] : vector<2x8x128xf32> to vector<2x8xf32>
    %69 = vector.shape_cast %68 : vector<2x8xf32> to vector<2x8x1xf32>
    %cst_50 = arith.constant 1.280000e+02 : f32
    %70 = vector.broadcast %cst_50 : f32 to vector<2x8x1xf32>
    %71 = arith.divf %69, %70 : vector<2x8x1xf32>
    %72 = vector.broadcast %64 : vector<2x8x1xf32> to vector<2x8x128xf32>
    %73 = arith.subf %60, %72 : vector<2x8x128xf32>
    %cst_51 = arith.constant 9.99999974E-6 : f32
    %74 = vector.broadcast %cst_51 : f32 to vector<2x8x1xf32>
    %75 = arith.addf %71, %74 : vector<2x8x1xf32>
    %76 = math.rsqrt %75 : vector<2x8x1xf32>
    %77 = vector.broadcast %76 : vector<2x8x1xf32> to vector<2x8x128xf32>
    %78 = arith.mulf %73, %77 : vector<2x8x128xf32>
    %79 = vector.shape_cast %8 : vector<1x128xf32> to vector<1x1x128xf32>
    %80 = vector.broadcast %79 : vector<1x1x128xf32> to vector<2x8x128xf32>
    %81 = arith.mulf %78, %80 : vector<2x8x128xf32>
    %82 = vector.shape_cast %9 : vector<1x128xf32> to vector<1x1x128xf32>
    %83 = vector.broadcast %82 : vector<1x1x128xf32> to vector<2x8x128xf32>
    %84 = arith.addf %81, %83 : vector<2x8x128xf32>
    %85 = vector.shape_cast %84 : vector<2x8x128xf32> to vector<16x128xf32>
    %86 = arith.truncf %85 : vector<16x128xf32> to vector<16x128xbf16>
    %cst_52 = arith.constant dense<0.000000e+00> : vector<16x128xf32>
    %87 = tpu.matmul %86, %2, %cst_52 {dimension_numbers = #tpu.dot_dimension_numbers<[1], [0], [0], [1], [0, 0, 1, 1], [], []>} : vector<16x128xbf16>, vector<128x128xbf16>, vector<16x128xf32> -> vector<16x128xf32>
    %88 = vector.broadcast %6 : vector<1x128xf32> to vector<16x128xf32>
    %89 = arith.addf %87, %88 : vector<16x128xf32>
    %cst_53 = arith.constant 0.000000e+00 : f32
    %90 = vector.broadcast %cst_53 : f32 to vector<16x128xf32>
    %91 = arith.maximumf %89, %90 : vector<16x128xf32>
    %92 = arith.truncf %91 : vector<16x128xf32> to vector<16x128xbf16>
    %cst_54 = arith.constant dense<0.000000e+00> : vector<16x128xf32>
    %93 = tpu.matmul %92, %3, %cst_54 {dimension_numbers = #tpu.dot_dimension_numbers<[1], [0], [0], [1], [0, 0, 1, 1], [], []>} : vector<16x128xbf16>, vector<128x128xbf16>, vector<16x128xf32> -> vector<16x128xf32>
    %94 = vector.broadcast %7 : vector<1x128xf32> to vector<16x128xf32>
    %95 = arith.addf %93, %94 : vector<16x128xf32>
    %96 = arith.addf %85, %95 : vector<16x128xf32>
    %cst_55 = arith.constant dense<0.000000e+00> : vector<16xf32>
    %97 = vector.multi_reduction <add>, %96, %cst_55 [1] : vector<16x128xf32> to vector<16xf32>
    %98 = vector.shape_cast %97 : vector<16xf32> to vector<16x1xf32>
    %cst_56 = arith.constant 1.280000e+02 : f32
    %99 = vector.broadcast %cst_56 : f32 to vector<16x1xf32>
    %100 = arith.divf %98, %99 : vector<16x1xf32>
    %101 = vector.broadcast %100 : vector<16x1xf32> to vector<16x128xf32>
    %102 = arith.subf %96, %101 : vector<16x128xf32>
    %103 = arith.mulf %102, %102 : vector<16x128xf32>
    %cst_57 = arith.constant dense<0.000000e+00> : vector<16xf32>
    %104 = vector.multi_reduction <add>, %103, %cst_57 [1] : vector<16x128xf32> to vector<16xf32>
    %105 = vector.shape_cast %104 : vector<16xf32> to vector<16x1xf32>
    %cst_58 = arith.constant 1.280000e+02 : f32
    %106 = vector.broadcast %cst_58 : f32 to vector<16x1xf32>
    %107 = arith.divf %105, %106 : vector<16x1xf32>
    %108 = vector.broadcast %100 : vector<16x1xf32> to vector<16x128xf32>
    %109 = arith.subf %96, %108 : vector<16x128xf32>
    %cst_59 = arith.constant 9.99999974E-6 : f32
    %110 = vector.broadcast %cst_59 : f32 to vector<16x1xf32>
    %111 = arith.addf %107, %110 : vector<16x1xf32>
    %112 = math.rsqrt %111 : vector<16x1xf32>
    %113 = vector.broadcast %112 : vector<16x1xf32> to vector<16x128xf32>
    %114 = arith.mulf %109, %113 : vector<16x128xf32>
    %115 = vector.broadcast %10 : vector<1x128xf32> to vector<16x128xf32>
    %116 = arith.mulf %114, %115 : vector<16x128xf32>
    %117 = vector.broadcast %11 : vector<1x128xf32> to vector<16x128xf32>
    %118 = arith.addf %116, %117 : vector<16x128xf32>
    %119 = vector.shape_cast %118 : vector<16x128xf32> to vector<2x8x128xf32>
    %c0_60 = arith.constant 0 : index
    %c0_61 = arith.constant 0 : index
    %c0_62 = arith.constant 0 : index
    %120 = vector.load %arg7[%c0_60, %c0_61, %c0_62] : memref<2x8x128xf32, #tpu.memory_space<vmem>>, vector<2x8x128xf32>
    tpu.vector_store %arg7[%c0_60, %c0_61, %c0_62], %119 {strides = array<i32>} : memref<2x8x128xf32, #tpu.memory_space<vmem>>, vector<2x8x128xf32>,
    return
  }
  func.func @transform_0(%arg0: i32) -> (i32, i32, i32) {
    %c0_i32 = arith.constant 0 : i32
    %c0_i32_0 = arith.constant 0 : i32
    %c0_i32_1 = arith.constant 0 : i32
    return %arg0, %c0_i32, %c0_i32_0 : i32, i32, i32
  }
  func.func @transform_1(%arg0: i32) -> (i32, i32, i32) {
    %c0_i32 = arith.constant 0 : i32
    %c0_i32_0 = arith.constant 0 : i32
    %c0_i32_1 = arith.constant 0 : i32
    return %arg0, %c0_i32, %c0_i32_0 : i32, i32, i32
  }
  func.func @transform_2(%arg0: i32) -> (i32, i32, i32) {
    %c0_i32 = arith.constant 0 : i32
    %c0_i32_0 = arith.constant 0 : i32
    %c0_i32_1 = arith.constant 0 : i32
    return %arg0, %c0_i32, %c0_i32_0 : i32, i32, i32
  }
  func.func @transform_3(%arg0: i32) -> (i32, i32) {
    %c0_i32 = arith.constant 0 : i32
    %c0_i32_0 = arith.constant 0 : i32
    %c0_i32_1 = arith.constant 0 : i32
    return %c0_i32, %c0_i32_0 : i32, i32
  }
  func.func @transform_4(%arg0: i32) -> (i32, i32) {
    %c0_i32 = arith.constant 0 : i32
    %c0_i32_0 = arith.constant 0 : i32
    %c0_i32_1 = arith.constant 0 : i32
    return %c0_i32, %c0_i32_0 : i32, i32
  }
  func.func @transform_5(%arg0: i32) -> (i32, i32) {
    %c0_i32 = arith.constant 0 : i32
    %c0_i32_0 = arith.constant 0 : i32
    %c0_i32_1 = arith.constant 0 : i32
    return %c0_i32, %c0_i32_0 : i32, i32
  }
  func.func @transform_6(%arg0: i32) -> (i32, i32, i32) {
    %c0_i32 = arith.constant 0 : i32
    %c0_i32_0 = arith.constant 0 : i32
    %c0_i32_1 = arith.constant 0 : i32
    return %arg0, %c0_i32, %c0_i32_0 : i32, i32, i32
  }
}

</mosaic_0001>

<bundles_post_ra>
// kernel: tpu_custom_call.1
= control target key start
LH: loop header
LB: loop body
LE: loop exit
PB: predicated region body
PF: predicated region fallthrough
CT: control target
= control target key end

     0   :  { %11 = vsyncpa [#allocation5], 0  ;;  %s1670_s0 = inlined_call_operand.hbm [shape: bf16[2,8,128], index: 0, kind: input, shape index: {}]   ;;  %s1671_s1 = inlined_call_operand.hbm [shape: bf16[2,8,128], index: 1, kind: input, shape index: {}]   ;;  %s1672_s2 = inlined_call_operand.hbm [shape: s8[2,8,16], index: 2, kind: input, shape index: {}]   ;;  %s1673_s3 = inlined_call_operand.hbm [shape: bf16[128,896], index: 3, kind: input, shape index: {}]   ;;  %s1674_s4 = inlined_call_operand.vmem [shape: f32[1,640], index: 4, kind: input, shape index: {}]   ;;  %s1675_s5 = inlined_call_operand.vmem [shape: f32[6,128], index: 5, kind: input, shape index: {}]   ;;  %s1676_s6 = inlined_call_operand.hbm [shape: f32[2,8,128], index: 6, kind: output, shape index: {}]  }
   0x1   :  { %12 = vsyncpa [#allocation8], 0 }
   0x2   :  { %13 = vsyncpa [#allocation11], 0 }
   0x3   :  { %14 = vsyncpa [#allocation6], 0  ;;  %s1467_s21 = smov [#allocation7]   ;;  %s1468_s23 = smov [#allocation4]  }
   0x4   :  { %s32_s22 = sshll.u32 %s1467_s21, 4  ;;  %s20_s24 = sshll.u32 %s1468_s23, 4  ;;  %s33_s22 = int_to_ptr.vmem [resolvable:$true] %s32_s22  ;;  %s1518_s24 = int_to_ptr.vmem [resolvable:$true] %s20_s24 }
   0x5   :  { %s1349_s27 = scalar_lea.hbm %s1671_s1, 128 }
   0x6   :  { %p1350_p0 = scmp.ne.s32.totalorder %s1671_s1, %s1349_s27  ;;  %p1353_p1 = scmp.lt.u32.totalorder %s1349_s27, %s1671_s1 }
   0x8   :  { %p1355_p2 = pnand %p1353_p1, %p1350_p0 }
   0xa   :  { %1358 = shalt.err (!%p1355_p2)
}
   0xb   :  { %s1359_s8 = scalar_lea.vmem %s33_s22, 128  ;;  %p1364_p4 = scmp.lt.s32.totalorder %s33_s22, %s33_s22 }
   0xc   :  { %p1360_p3 = scmp.ne.s32.totalorder %s33_s22, %s1359_s8  ;;  %p1365_p5 = scmp.lt.s32.totalorder %s1359_s8, %s1359_s8 }
   0xe   :  { %p1366_p6 = por %p1365_p5, %p1364_p4 }
  0x10   :  { %p1367_p7 = pnand %p1366_p6, %p1360_p3 }
  0x12   :  { %1370 = shalt.err (!%p1367_p7)
}
  0x13   :  { %s1469_s9 = smov 64   ;;  %s1470_s10 = smov 4  }
  0x14   :  { %38 = dma.hbm_to_vmem [thread:$0]  %s1671_s1, 128, %s33_s22, [#allocation8], %s1469_s9, %s1469_s9, %s1470_s10  }
  0x15   :  { %s1371_s15 = scalar_lea.hbm %s1670_s0, 128 }
  0x16   :  { %p1372_p8 = scmp.ne.s32.totalorder %s1670_s0, %s1371_s15  ;;  %p1375_p9 = scmp.lt.u32.totalorder %s1371_s15, %s1670_s0 }
  0x18   :  { %p1377_p10 = pnand %p1375_p9, %p1372_p8 }
  0x1a   :  { %1380 = shalt.err (!%p1377_p10)
}
  0x1b   :  { %s1381_s20 = scalar_lea.vmem %s1518_s24, 128  ;;  %p1386_p12 = scmp.lt.s32.totalorder %s1518_s24, %s1518_s24 }
  0x1c   :  { %p1382_p11 = scmp.ne.s32.totalorder %s1518_s24, %s1381_s20  ;;  %p1387_p13 = scmp.lt.s32.totalorder %s1381_s20, %s1381_s20 }
  0x1e   :  { %p1388_p0 = por %p1387_p13, %p1386_p12 }
  0x20   :  { %p1389_p1 = pnand %p1388_p0, %p1382_p11 }
  0x22   :  { %1392 = shalt.err (!%p1389_p1)
}
  0x23   :  { %26 = dma.hbm_to_vmem [thread:$0]  %s1670_s0, 128, %s1518_s24, [#allocation5], %s1469_s9, %s1469_s9, %s1470_s10  }
  0x24   :  { %s1471_s22 = smov [#allocation9]   ;;  %s1393_s27 = scalar_lea.hbm %s1672_s2, 64 }
  0x25   :  { %s44_s23 = sshll.u32 %s1471_s22, 4  ;;  %p1394_p2 = scmp.ne.s32.totalorder %s1672_s2, %s1393_s27  ;;  %s45_s23 = int_to_ptr.vmem [resolvable:$true] %s44_s23 }
  0x26   :  { %p1397_p3 = scmp.lt.u32.totalorder %s1393_s27, %s1672_s2 }
  0x28   :  { %p1399_p4 = pnand %p1397_p3, %p1394_p2 }
  0x2a   :  { %1402 = shalt.err (!%p1399_p4)
}
  0x2b   :  { %s1403_s8 = scalar_lea.vmem %s45_s23, 64  ;;  %p1408_p6 = scmp.lt.s32.totalorder %s45_s23, %s45_s23 }
  0x2c   :  { %p1404_p5 = scmp.ne.s32.totalorder %s45_s23, %s1403_s8  ;;  %p1409_p7 = scmp.lt.s32.totalorder %s1403_s8, %s1403_s8 }
  0x2e   :  { %p1410_p8 = por %p1409_p7, %p1408_p6 }
  0x30   :  { %p1411_p9 = pnand %p1410_p8, %p1404_p5 }
  0x32   :  { %1414 = shalt.err (!%p1411_p9)
}
  0x33   :  { %s1472_s0 = smov 32   ;;  %s1473_s24 = smov 2  }
  0x34   :  { %50 = dma.hbm_to_vmem [thread:$0]  %s1672_s2, 64, %s45_s23, [#allocation8], %s1472_s0, %s1472_s0, %s1473_s24  }
  0x35   :  { %s1474_s11 = smov [#allocation10]   ;;  %s1415_s15 = scalar_lea.hbm %s1673_s3, 7168 }
  0x36   :  { %s56_s12 = sshll.u32 %s1474_s11, 4  ;;  %p1416_p10 = scmp.ne.s32.totalorder %s1673_s3, %s1415_s15  ;;  %s57_s12 = int_to_ptr.vmem [resolvable:$true] %s56_s12 }
  0x37   :  { %p1419_p11 = scmp.lt.u32.totalorder %s1415_s15, %s1673_s3 }
  0x39   :  { %p1421_p12 = pnand %p1419_p11, %p1416_p10 }
  0x3b   :  { %1424 = shalt.err (!%p1421_p12)
}
  0x3c   :  { %s1425_s20 = scalar_lea.vmem %s57_s12, 7168  ;;  %p1430_p0 = scmp.lt.s32.totalorder %s57_s12, %s57_s12 }
  0x3d   :  { %p1426_p13 = scmp.ne.s32.totalorder %s57_s12, %s1425_s20  ;;  %p1431_p1 = scmp.lt.s32.totalorder %s1425_s20, %s1425_s20 }
  0x3f   :  { %p1432_p2 = por %p1431_p1, %p1430_p0 }
  0x41   :  { %p1433_p3 = pnand %p1432_p2, %p1426_p13 }
  0x43   :  { %1436 = shalt.err (!%p1433_p3)
}
  0x44   :  { %s1475_s2 = smov 448   ;;  %s1476_s1 = smov 28  }
  0x45   :  { %62 = dma.hbm_to_vmem [thread:$0]  %s1673_s3, 7168, %s57_s12, [#allocation11], %s1475_s2, %s1475_s2, %s1476_s1  }
  0x46   :  { %1459 = dma.done.wait [#allocation5], 128  }
  0x47   :  { %1460 = vsyncadd [#allocation5], 4294967168 }
  0x48   :  { %1461 = dma.done.wait [#allocation8], 192  }
  0x49   :  { %1462 = vsyncadd [#allocation8], 4294967104 }
  0x4a   :  { %1463 = dma.done.wait [#allocation11], 7168  }
  0x4b   :  { %1464 = vsyncadd [#allocation11], 4294960128  ;;  %v1477_v0 = vmov 0   ;;  %v1478_v1 = vmov 0.0   ;;  %vm1479_vm0 = vmmov 0   ;;  %v1580_v22 = vld [vmem:[#allocation4] sm:$0xff]   ;;  %v181_v47 = vlaneseq }
  0x4c   :  { %356 = vmatprep.mubr.bf16.mxu0 %v1477_v0  ;;  %1158 = vmatprep.subr.bf16.mxu1 %v1478_v1  ;;  %v1258_v2 = vld [vmem:[#allocation10 + $0x4] ss:$28 sps:$4 sm:$0xff]   ;;  %v1261_v4 = vld [vmem:[#allocation10 + $0x3c] ss:$28 sps:$4 sm:$0xff]   ;;  %v1264_v6 = vld [vmem:[#allocation10 + $0x74] ss:$28 sps:$4 sm:$0xff]  }
  0x4d   :  { %1174 = vmatprep.mubr.msk.bf16.mxu1 %vm1479_vm0, %v1478_v1  ;;  %v1260_v3 = vld [vmem:[#allocation10] ss:$28 sps:$4 sm:$0xff]   ;;  %324 = vmatprep.subr.bf16.mxu0 %v1258_v2  ;;  %v1263_v5 = vld [vmem:[#allocation10 + $0x38] ss:$28 sps:$4 sm:$0xff]   ;;  %v1266_v7 = vld [vmem:[#allocation10 + $0x70] ss:$28 sps:$4 sm:$0xff]  }
  0x4e   :  { %325 = vmatpush1.bf16.msra.mxu0 %v1260_v3  ;;  %v1267_v8 = vld [vmem:[#allocation10 + $0xac] ss:$28 sps:$4 sm:$0xff]   ;;  %v1270_v10 = vld [vmem:[#allocation10 + $0xe4] ss:$28 sps:$4 sm:$0xff]   ;;  %v1273_v14 = vld [vmem:[#allocation10 + $0x11c] ss:$28 sps:$4 sm:$0xff]  }
  0x4f   :  { %326 = vmatprep.subr.bf16.mxu0 %v1261_v4  ;;  %v1269_v9 = vld [vmem:[#allocation10 + $0xa8] ss:$28 sps:$4 sm:$0xff]   ;;  %v1272_v12 = vld [vmem:[#allocation10 + $0xe0] ss:$28 sps:$4 sm:$0xff]   ;;  %v1275_v15 = vld [vmem:[#allocation10 + $0x118] ss:$28 sps:$4 sm:$0xff]  }
  0x50   :  { %v1286_v11 = vld [vmem:[#allocation10 + $0x8] ss:$28 sps:$4 sm:$0xff]   ;;  %v1290_v13 = vld [vmem:[#allocation10 + $0x40] ss:$28 sps:$4 sm:$0xff]   ;;  %v1294_v16 = vld [vmem:[#allocation10 + $0x78] ss:$28 sps:$4 sm:$0xff]  }
  0x51   :  { %1159 = vmatpush3.bf16.msra.mxu1 %v1286_v11  ;;  %v1276_v17 = vld [vmem:[#allocation10 + $0x154] ss:$28 sps:$4 sm:$0xff]   ;;  %v1279_v20 = vld [vmem:[#allocation10 + $0x18c] ss:$28 sps:$4 sm:$0xff]   ;;  %v1306_v27 = vld [vmem:[#allocation10 + $0x120] ss:$28 sps:$4 sm:$0xff]  }
  0x52   :  { %327 = vmatpush1.bf16.msra.mxu0 %v1263_v5  ;;  %1160 = vmatprep.subr.bf16.mxu1 %v1478_v1  ;;  %v1278_v18 = vld [vmem:[#allocation10 + $0x150] ss:$28 sps:$4 sm:$0xff]   ;;  %v1281_v21 = vld [vmem:[#allocation10 + $0x188] ss:$28 sps:$4 sm:$0xff]   ;;  %v1310_v29 = vld [vmem:[#allocation10 + $0x158] ss:$28 sps:$4 sm:$0xff]  }
  0x53   :  { %328 = vmatprep.subr.bf16.mxu0 %v1264_v6  ;;  %v1298_v19 = vld [vmem:[#allocation10 + $0xb0] ss:$28 sps:$4 sm:$0xff]   ;;  %v1302_v23 = vld [vmem:[#allocation10 + $0xe8] ss:$28 sps:$4 sm:$0xff]   ;;  %v1293_v30 = vld [vmem:[#allocation10 + $0x80] ss:$28 sps:$4 sm:$0xff]  }
  0x54   :  { %v1285_v24 = vld [vmem:[#allocation10 + $0x10] ss:$28 sps:$4 sm:$0xff]   ;;  %v1289_v26 = vld [vmem:[#allocation10 + $0x48] ss:$28 sps:$4 sm:$0xff]   ;;  %v1291_v31 = vld [vmem:[#allocation10 + $0x7c] ss:$28 sps:$4 sm:$0xff]  }
  0x55   :  { %1161 = vmatpush3.bf16.msra.mxu1 %v1290_v13  ;;  %v1283_v25 = vld [vmem:[#allocation10 + $0xc] ss:$28 sps:$4 sm:$0xff]   ;;  %v1287_v28 = vld [vmem:[#allocation10 + $0x44] ss:$28 sps:$4 sm:$0xff]   ;;  %v1297_v33 = vld [vmem:[#allocation10 + $0xb8] ss:$28 sps:$4 sm:$0xff]  }
  0x56   :  { %329 = vmatpush1.bf16.msra.mxu0 %v1266_v7  ;;  %1162 = vmatprep.subr.bf16.mxu1 %v1478_v1  ;;  %v1314_v32 = vld [vmem:[#allocation10 + $0x190] ss:$28 sps:$4 sm:$0xff]   ;;  %v1305_v37 = vld [vmem:[#allocation10 + $0x128] ss:$28 sps:$4 sm:$0xff]   ;;  %v1309_v39 = vld [vmem:[#allocation10 + $0x160] ss:$28 sps:$4 sm:$0xff]  }
  0x57   :  { %330 = vmatprep.subr.bf16.mxu0 %v1267_v8  ;;  %v1295_v34 = vld [vmem:[#allocation10 + $0xb4] ss:$28 sps:$4 sm:$0xff]   ;;  %v1299_v36 = vld [vmem:[#allocation10 + $0xec] ss:$28 sps:$4 sm:$0xff]   ;;  %v1303_v38 = vld [vmem:[#allocation10 + $0x124] ss:$28 sps:$4 sm:$0xff]  }
  0x58   :  { %v1301_v35 = vld [vmem:[#allocation10 + $0xf0] ss:$28 sps:$4 sm:$0xff]   ;;  %v1307_v40 = vld [vmem:[#allocation10 + $0x15c] ss:$28 sps:$4 sm:$0xff]   ;;  %v182_v49 = vshrl.u32 %v181_v47, 7  ;;  %vm656_vm4 = vcmask 130048  }
  0x59   :  { %1163 = vmatpush3.bf16.msra.mxu1 %v1294_v16  ;;  %v1313_v41 = vld [vmem:[#allocation10 + $0x198] ss:$28 sps:$4 sm:$0xff]   ;;  %v162_v51 = vld [vmem:[%s1674_s4] sm:$0x7]  ;;  %v163_v59 = vld [vmem:[%s1674_s4 + $0x3] sm:$0x3] }
  0x5a   :  { %331 = vmatpush1.bf16.msra.mxu0 %v1269_v9  ;;  %1164 = vmatprep.subr.bf16.mxu1 %v1478_v1  ;;  %v1311_v42 = vld [vmem:[#allocation10 + $0x194] ss:$28 sps:$4 sm:$0xff]   ;;  %v191_v50 = vsub.s32 2, %v182_v49  ;;  %v187_v58 = vsub.s32 1, %v182_v49  ;;  %v183_v60 = vsub.s32 0, %v182_v49  ;;  %s1480_s12 = smov [#allocation12]  }
  0x5b   :  { %332 = vmatprep.subr.bf16.mxu0 %v1270_v10  ;;  %v1315_v43 = vld [vmem:[#allocation7] sm:$0xff]   ;;  %s1043_s13 = sshll.u32 %s1480_s12, 4  ;;  %s1044_s13 = int_to_ptr.vmem [resolvable:$true] %s1043_s13 }
  0x5c   :  { %v192_v53 = vrot.slane %v162_v51, %v191_v50  ;;  %v188_v61 = vrot.slane %v162_v51, %v187_v58  ;;  %v412_v62 = vrot.slane %v163_v59, %v183_v60  ;;  %v416_v63 = vrot.slane %v163_v59, %v187_v58  ;;  %s1437_s14 = scalar_lea.vmem %s1044_s13, 256  ;;  %p1442_p5 = scmp.lt.s32.totalorder %s1044_s13, %s1044_s13 }
  0x5d   :  { %1165 = vmatpush3.bf16.msra.mxu1 %v1298_v19  ;;  %v184_v7 = vrot.slane %v162_v51, %v183_v60  ;;  %p1438_p4 = scmp.ne.s32.totalorder %s1044_s13, %s1437_s14  ;;  %p1443_p6 = scmp.lt.s32.totalorder %s1437_s14, %s1437_s14 }
  0x5e   :  { %333 = vmatpush1.bf16.msra.mxu0 %v1272_v12  ;;  %1166 = vmatprep.subr.bf16.mxu1 %v1478_v1 }
  0x5f   :  { %334 = vmatprep.subr.bf16.mxu0 %v1273_v14  ;;  %p1444_p7 = por %p1443_p6, %p1442_p5 }
  0x61   :  { %1167 = vmatpush3.bf16.msra.mxu1 %v1302_v23  ;;  %v558_v23 = vld [vmem:[#allocation9] sm:$0x3]  ;;  %p1445_p8 = pnand %p1444_p7, %p1438_p4 }
  0x62   :  { %335 = vmatpush1.bf16.msra.mxu0 %v1275_v15  ;;  %1168 = vmatprep.subr.bf16.mxu1 %v1478_v1  ;;  %vm560_vm1 = vnez %v558_v23  ;;  %v1321_v23 = vld [vmem:[#allocation10 + $0x12c] ss:$28 sps:$4 sm:$0xff]  }
  0x63   :  { %336 = vmatprep.subr.bf16.mxu0 %v1276_v17 }
  0x65   :  { %1169 = vmatpush3.bf16.msra.mxu1 %v1306_v27 }
  0x66   :  { %337 = vmatpush1.bf16.msra.mxu0 %v1278_v18  ;;  %1170 = vmatprep.subr.bf16.mxu1 %v1478_v1 }
  0x67   :  { %338 = vmatprep.subr.bf16.mxu0 %v1279_v20 }
  0x69   :  { %1171 = vmatpush3.bf16.msra.mxu1 %v1310_v29 }
  0x6a   :  { %339 = vmatpush1.bf16.msra.mxu0 %v1281_v21  ;;  %1172 = vmatprep.subr.bf16.mxu1 %v1478_v1 }
  0x6b   :  { %499 = vmatprep.subr.bf16.mxu0 %v1285_v24  ;;  %v648_v24 = vsel %vm560_vm1, 16843009, %v1477_v0 }
  0x6d   :  { %357 = vmatmul.mubr.bf16.vlgmr.msra.gmra.mrb[0].mxu0 %v1580_v22  ;;  %1173 = vmatpush3.bf16.msra.mxu1 %v1314_v32 }
  0x6e   :  { %500 = vmatpush1.bf16.msra.mxu0 %v1283_v25  ;;  %531 = vmatprep.mubr.bf16.mxu0 %v1477_v0  ;;  %v559_v25 = vld [vmem:[#allocation9 + $0x2] sm:$0x3] }
  0x6f   :  { %501 = vmatprep.subr.bf16.mxu0 %v1289_v26  ;;  %1178 = vmatprep.subr.bf16.mxu1 %v1478_v1  ;;  %v650_v26 = vunpack.c.0.s8 %v648_v24  ;;  %vm561_vm2 = vnez %v559_v25  ;;  %v1322_v24 = vld [vmem:[#allocation10 + $0x164] ss:$28 sps:$4 sm:$0xff]   ;;  %v1323_v25 = vld [vmem:[#allocation10 + $0x19c] ss:$28 sps:$4 sm:$0xff]  }
  0x70   :  { %1175 = vmatmul.mubr.bf16.vlgmr.msra.gmra.mrb[0].mxu1 %v1580_v22 }
  0x71   :  { %1180 = vmatprep.mubr.msk.bf16.mxu1 %vm1479_vm0, %v1478_v1  ;;  %vm652_vm3 = vcmp.ne.s32.totalorder %v650_v26, 0  ;;  %v1324_v26 = vld [vmem:[#allocation10 + $0x18] ss:$28 sps:$4 sm:$0xff]  }
  0x72   :  { %502 = vmatpush1.bf16.msra.mxu0 %v1287_v28 }
  0x73   :  { %503 = vmatprep.subr.bf16.mxu0 %v1293_v30  ;;  %v649_v30 = vsel %vm561_vm2, 16843009, %v1477_v0 }
  0x76   :  { %504 = vmatpush1.bf16.msra.mxu0 %v1291_v31 }
  0x77   :  { %505 = vmatprep.subr.bf16.mxu0 %v1297_v33 }
  0x7a   :  { %506 = vmatpush1.bf16.msra.mxu0 %v1295_v34 }
  0x7b   :  { %507 = vmatprep.subr.bf16.mxu0 %v1301_v35  ;;  %v651_v35 = vunpack.c.0.s8 %v649_v30  ;;  %v1328_v30 = vld [vmem:[#allocation10 + $0xf8] ss:$28 sps:$4 sm:$0xff]  }
  0x7d   :  { %vm653_vm5 = vcmp.ne.s32.totalorder %v651_v35, 0 }
  0x7e   :  { %508 = vmatpush1.bf16.msra.mxu0 %v1299_v36 }
  0x7f   :  { %509 = vmatprep.subr.bf16.mxu0 %v1305_v37 }
  0x82   :  { %510 = vmatpush1.bf16.msra.mxu0 %v1303_v38 }
  0x83   :  { %511 = vmatprep.subr.bf16.mxu0 %v1309_v39 }
  0x86   :  { %512 = vmatpush1.bf16.msra.mxu0 %v1307_v40 }
  0x87   :  { %513 = vmatprep.subr.bf16.mxu0 %v1313_v41 }
  0x8a   :  { %514 = vmatpush1.bf16.msra.mxu0 %v1311_v42 }
  0x8b   :  { %1202 = vmatprep.subr.bf16.mxu0 %v1478_v1 }
  0x8d   :  { %532 = vmatmul.mubr.bf16.vlgmr.msra.gmra.mrb[4].mxu0 %v1315_v43 }
  0x8e   :  { %1218 = vmatprep.mubr.msk.bf16.mxu0 %vm1479_vm0, %v1478_v1 }
 0x140   :  { %v358_v44 = vpop.f32.mrb[0].mxu0 }
 0x141   :  { %v360_v45 = vpop.f32.mrb[1].mxu0  ;;  %v359_v17 = vadd.f32 %v358_v44, %v184_v7 }
 0x142   :  { %v362_v46 = vpop.f32.mrb[2].mxu0  ;;  %v361_v4 = vadd.f32 %v360_v45, %v188_v61 }
 0x143   :  { %v364_v48 = vpop.f32.mrb[3].mxu0  ;;  %v401_v52 = vpop.f32.mrb[0].mxu1  ;;  %v562_v19 = vpack.c.bf16 %v359_v17, %v359_v17  ;;  %v363_v20 = vadd.f32 %v362_v46, %v184_v7 }
 0x144   :  { %v1176_v54 = vpop.f32.mrb[1].mxu1  ;;  %v402_v3 = vadd.f32 %v401_v52, %v192_v53  ;;  %v365_v10 = vadd.f32 %v364_v48, %v188_v61 }
 0x145   :  { %v404_v55 = vpop.f32.mrb[2].mxu1  ;;  %v563_v21 = vpack.c.bf16 %v363_v20, %v363_v20  ;;  %v1319_v20 = vld [vmem:[#allocation10 + $0xbc] ss:$28 sps:$4 sm:$0xff]  }
 0x146   :  { %v1598_v56 = vadd.f32 %v404_v55, %v192_v53  ;;  %v1177_v57 = vpop.f32.mrb[3].mxu1 }
 0x160   :  { %v533_v2 = vpop.f32.mrb[4].mxu0 }
 0x161   :  { %v534_v5 = vadd.f32 %v533_v2, %v412_v62  ;;  %v535_v6 = vpop.f32.mrb[5].mxu0  ;;  %v173_v2 = vunpack.c.h.bf16 %v1580_v22 }
 0x162   :  { %v536_v8 = vadd.f32 %v535_v6, %v416_v63  ;;  %v537_v9 = vpop.f32.mrb[6].mxu0 }
 0x163   :  { %v564_v11 = vpack.c.bf16 %v534_v5, %v361_v4  ;;  %v538_v12 = vadd.f32 %v537_v9, %v412_v62  ;;  %v539_v13 = vpop.f32.mrb[7].mxu0 }
 0x164   :  { %v679_v14 = vpack.c.bf16 %v536_v8, %v402_v3  ;;  %v540_v15 = vadd.f32 %v539_v13, %v416_v63 }
 0x165   :  { %v565_v16 = vpack.c.bf16 %v538_v12, %v365_v10  ;;  %1179 = vmatpush3.bf16.xpose.msra.mxu1 %v564_v11 }
 0x166   :  { %v680_v18 = vpack.c.bf16 %v540_v15, %v1598_v56  ;;  %1184 = vmatprep.subr.bf16.mxu1 %v1478_v1  ;;  %v172_v56 = vunpack.c.l.bf16 %v1580_v22  ;;  %v1317_v22 = vld [vmem:[#allocation10 + $0x4c] ss:$28 sps:$4 sm:$0xff]  }
 0x16c   :  { %1181 = vmatmul.mubr.bf16.vlgmr.msra.gmra.mrb[4].mxu1 %v562_v19  ;;  %v1318_v19 = vld [vmem:[#allocation10 + $0x84] ss:$28 sps:$4 sm:$0xff]  }
 0x16d   :  { %1185 = vmatpush3.bf16.xpose.msra.mxu1 %v565_v16  ;;  %1186 = vmatprep.mubr.msk.bf16.mxu1 %vm1479_vm0, %v1478_v1 }
 0x16e   :  { %1190 = vmatprep.subr.bf16.mxu1 %v1478_v1 }
 0x174   :  { %1187 = vmatmul.mubr.bf16.vlgmr.msra.gmra.mrb[8].mxu1 %v563_v21  ;;  %v1320_v21 = vld [vmem:[#allocation10 + $0xf4] ss:$28 sps:$4 sm:$0xff]  }
 0x175   :  { %1191 = vmatpush3.bf16.msra.mxu1 %v679_v14  ;;  %1192 = vmatprep.mubr.msk.bf16.mxu1 %vm1479_vm0, %v1478_v1 }
 0x176   :  { %1196 = vmatprep.subr.bf16.mxu1 %v1478_v1 }
 0x23f   :  { %v600_v27 = vpop.f32.mrb[4].mxu1 }
 0x240   :  { %v646_v28 = vmul.f32 0.088388346, %v600_v27  ;;  %v1182_v29 = vpop.f32.mrb[5].mxu1  ;;  %v1325_v27 = vld [vmem:[#allocation10 + $0x50] ss:$28 sps:$4 sm:$0xff]  }
 0x241   :  { %v603_v31 = vpop.f32.mrb[6].mxu1  ;;  %v1327_v29 = vld [vmem:[#allocation10 + $0xc0] ss:$28 sps:$4 sm:$0xff]  }
 0x242   :  { %v1183_v32 = vpop.f32.mrb[7].mxu1  ;;  %v654_v33 = vsel %vm652_vm3, -1e+30, %v646_v28  ;;  %v1326_v28 = vld [vmem:[#allocation10 + $0x88] ss:$28 sps:$4 sm:$0xff]  }
 0x243   :  { %v657_v34 = vsel %vm656_vm4, %v654_v33, -inf  ;;  %v1329_v31 = vld [vmem:[#allocation10 + $0x130] ss:$28 sps:$4 sm:$0xff]  }
 0x244   :  { %658 = vmax.xlane.f32.xlu0 %v657_v34 }
 0x247   :  { %v640_v36 = vpop.f32.mrb[8].mxu1 }
 0x248   :  { %v647_v37 = vmul.f32 0.088388346, %v640_v36  ;;  %v1188_v38 = vpop.f32.mrb[9].mxu1 }
 0x249   :  { %v643_v39 = vpop.f32.mrb[10].mxu1 }
 0x24a   :  { %v1189_v40 = vpop.f32.mrb[11].mxu1  ;;  %v655_v41 = vsel %vm653_vm5, -1e+30, %v647_v37 }
 0x24b   :  { %v660_v42 = vsel %vm656_vm4, %v655_v41, -inf  ;;  %v1101_v40 = vld [vmem:[%s1675_s5 + $0x2] ss:$0 sm:$0xff] }
 0x24c   :  { %661 = vmax.xlane.f32.xlu0 %v660_v42 }
 0x2d1   :  { %v659_v43 = vpop.xlane.xlu0 %658 }
 0x2d2   :  { %v663_v44 = vsub.f32 %v654_v33, %v659_v43 }
 0x2d4   :  { %v665_v0 = vmul.f32 1.442695, %v663_v44  ;;  %v1102_v44 = vld [vmem:[%s1675_s5 + $0x3] ss:$0 sm:$0xff] }
 0x2d6   :  { %1333 = vpow2.f32 %v665_v0 }
 0x2d9   :  { %v662_v45 = vpop.xlane.xlu0 %661 }
 0x2da   :  { %v664_v46 = vsub.f32 %v655_v41, %v662_v45 }
 0x2dc   :  { %v667_v47 = vmul.f32 1.442695, %v664_v46 }
 0x2de   :  { %1335 = vpow2.f32 %v667_v47 }
 0x2e0   :  { %v1334_v48 = vpop.eup %1333 }
 0x2e1   :  { %v669_v49 = vsel %vm656_vm4, %v1334_v48, 0.0  ;;  %v677_v50 = vpack.c.bf16 %v1334_v48, %v1334_v48  ;;  %v1330_v48 = vld [vmem:[#allocation10 + $0x168] ss:$28 sps:$4 sm:$0xff]  }
 0x2e2   :  { %670 = vadd.xlane.f32.xlu1 %v669_v49  ;;  %v1331_v49 = vld [vmem:[#allocation10 + $0x1a0] ss:$28 sps:$4 sm:$0xff]  }
 0x2e3   :  { %1193 = vmatmul.mubr.msk.bf16.vlgmr.msra.gmra.mrb[12].mxu1 %vm656_vm4, %v677_v50  ;;  %v1103_v50 = vld [vmem:[%s1675_s5] ss:$0 sm:$0xff] }
 0x2e4   :  { %1197 = vmatpush3.bf16.msra.mxu1 %v680_v18  ;;  %1198 = vmatprep.mubr.msk.bf16.mxu1 %vm1479_vm0, %v1478_v1  ;;  %v1316_v18 = vld [vmem:[#allocation10 + $0x14] ss:$28 sps:$4 sm:$0xff]  }
 0x2e5   :  { %1222 = vmatprep.subr.bf16.mxu1 %v1478_v1  ;;  %1203 = vmatpush3.bf16.msra.mxu0 %v1316_v18 }
 0x2e6   :  { %1204 = vmatprep.subr.bf16.mxu0 %v1478_v1 }
 0x2e8   :  { %v1336_v51 = vpop.eup %1335 }
 0x2e9   :  { %v672_v52 = vsel %vm656_vm4, %v1336_v51, 0.0  ;;  %v678_v53 = vpack.c.bf16 %v1336_v51, %v1336_v51  ;;  %1205 = vmatpush3.bf16.msra.mxu0 %v1317_v22 }
 0x2ea   :  { %673 = vadd.xlane.f32.xlu1 %v672_v52  ;;  %1206 = vmatprep.subr.bf16.mxu0 %v1478_v1 }
 0x2eb   :  { %1199 = vmatmul.mubr.msk.bf16.vlgmr.msra.gmra.mrb[16].mxu1 %vm656_vm4, %v678_v53 }
 0x2ec   :  { %1238 = vmatprep.mubr.msk.bf16.mxu1 %vm1479_vm0, %v1478_v1  ;;  %1223 = vmatpush3.bf16.msra.mxu1 %v1324_v26 }
 0x2ed   :  { %1207 = vmatpush3.bf16.msra.mxu0 %v1318_v19  ;;  %1224 = vmatprep.subr.bf16.mxu1 %v1478_v1 }
 0x2ee   :  { %1208 = vmatprep.subr.bf16.mxu0 %v1478_v1 }
 0x2f0   :  { %1225 = vmatpush3.bf16.msra.mxu1 %v1325_v27 }
 0x2f1   :  { %1209 = vmatpush3.bf16.msra.mxu0 %v1319_v20  ;;  %1226 = vmatprep.subr.bf16.mxu1 %v1478_v1  ;;  %v1121_v20 = vld [vmem:[%s1675_s5 + $0x4] ss:$0 sm:$0xff] }
 0x2f2   :  { %1210 = vmatprep.subr.bf16.mxu0 %v1478_v1 }
 0x2f4   :  { %1227 = vmatpush3.bf16.msra.mxu1 %v1326_v28 }
 0x2f5   :  { %1211 = vmatpush3.bf16.msra.mxu0 %v1320_v21  ;;  %1228 = vmatprep.subr.bf16.mxu1 %v1478_v1 }
 0x2f6   :  { %1212 = vmatprep.subr.bf16.mxu0 %v1478_v1 }
 0x2f8   :  { %1229 = vmatpush3.bf16.msra.mxu1 %v1327_v29 }
 0x2f9   :  { %1213 = vmatpush3.bf16.msra.mxu0 %v1321_v23  ;;  %1230 = vmatprep.subr.bf16.mxu1 %v1478_v1 }
 0x2fa   :  { %1214 = vmatprep.subr.bf16.mxu0 %v1478_v1 }
 0x2fc   :  { %1231 = vmatpush3.bf16.msra.mxu1 %v1328_v30 }
 0x2fd   :  { %1215 = vmatpush3.bf16.msra.mxu0 %v1322_v24  ;;  %1232 = vmatprep.subr.bf16.mxu1 %v1478_v1  ;;  %v1122_v24 = vld [vmem:[%s1675_s5 + $0x5] ss:$0 sm:$0xff] }
 0x2fe   :  { %1216 = vmatprep.subr.bf16.mxu0 %v1478_v1 }
 0x300   :  { %1233 = vmatpush3.bf16.msra.mxu1 %v1329_v31 }
 0x301   :  { %1217 = vmatpush3.bf16.msra.mxu0 %v1323_v25  ;;  %1234 = vmatprep.subr.bf16.mxu1 %v1478_v1 }
 0x304   :  { %1235 = vmatpush3.bf16.msra.mxu1 %v1330_v48 }
 0x305   :  { %1236 = vmatprep.subr.bf16.mxu1 %v1478_v1  ;;  %v1112_v1 = vld [vmem:[%s1675_s5 + $0x1] ss:$0 sm:$0xff] }
 0x308   :  { %1237 = vmatpush3.bf16.msra.mxu1 %v1331_v49 }
 0x36f   :  { %v671_v54 = vpop.xlane.xlu1 %670 }
 0x370   :  { %1337 = vrcp.f32 %v671_v54 }
 0x377   :  { %v674_v55 = vpop.xlane.xlu1 %673 }
 0x378   :  { %1339 = vrcp.f32 %v674_v55 }
 0x37a   :  { %v1338_v57 = vpop.eup %1337 }
 0x382   :  { %v1340_v3 = vpop.eup %1339 }
 0x3b6   :  { %v718_v58 = vpop.f32.mrb[12].mxu1 }
 0x3b7   :  { %v767_v59 = vmul.f32 %v1338_v57, %v718_v58  ;;  %v1194_v60 = vpop.f32.mrb[13].mxu1 }
 0x3b8   :  { %v721_v61 = vpop.f32.mrb[14].mxu1 }
 0x3b9   :  { %v1195_v62 = vpop.f32.mrb[15].mxu1  ;;  %v773_v63 = vadd.f32 %v767_v59, %v172_v56 }
 0x3bb   :  { %775 = vadd.xlane.f32.xlu0 %v773_v63 }
 0x3be   :  { %v761_v4 = vpop.f32.mrb[16].mxu1 }
 0x3bf   :  { %v768_v5 = vmul.f32 %v1340_v3, %v761_v4  ;;  %v1200_v6 = vpop.f32.mrb[17].mxu1 }
 0x3c0   :  { %v764_v7 = vpop.f32.mrb[18].mxu1 }
 0x3c1   :  { %v1201_v8 = vpop.f32.mrb[19].mxu1  ;;  %v774_v9 = vadd.f32 %v768_v5, %v173_v2 }
 0x3c3   :  { %777 = vadd.xlane.f32.xlu1 %v774_v9 }
 0x448   :  { %v776_v10 = vpop.xlane.xlu0 %775 }
 0x449   :  { %v780_v11 = vmul.f32 0.0078125, %v776_v10 }
 0x44b   :  { %v782_v12 = vsub.f32 %v773_v63, %v780_v11 }
 0x44d   :  { %v784_v13 = vmul.f32 %v782_v12, %v782_v12 }
 0x44f   :  { %786 = vadd.xlane.f32.xlu0 %v784_v13 }
 0x450   :  { %v778_v14 = vpop.xlane.xlu1 %777 }
 0x451   :  { %v781_v15 = vmul.f32 0.0078125, %v778_v14 }
 0x453   :  { %v783_v16 = vsub.f32 %v774_v9, %v781_v15 }
 0x455   :  { %v785_v17 = vmul.f32 %v783_v16, %v783_v16 }
 0x457   :  { %788 = vadd.xlane.f32.xlu1 %v785_v17 }
 0x4dc   :  { %v787_v32 = vpop.xlane.xlu0 %786 }
 0x4dd   :  { %v790_v33 = vmul.f32 0.0078125, %v787_v32 }
 0x4df   :  { %v792_v34 = vadd.f32 1e-05, %v790_v33 }
 0x4e1   :  { %1341 = vrsqrt.f32 %v792_v34 }
 0x4e4   :  { %v789_v35 = vpop.xlane.xlu1 %788 }
 0x4e5   :  { %v791_v36 = vmul.f32 0.0078125, %v789_v35 }
 0x4e7   :  { %v793_v37 = vadd.f32 1e-05, %v791_v36 }
 0x4e9   :  { %1343 = vrsqrt.f32 %v793_v37 }
 0x4eb   :  { %v1342_v38 = vpop.eup %1341 }
 0x4ec   :  { %v796_v39 = vmul.f32 %v1342_v38, %v782_v12 }
 0x4ee   :  { %v802_v43 = vmul.f32 %v1101_v40, %v796_v39 }
 0x4f0   :  { %v808_v45 = vadd.f32 %v1102_v44, %v802_v43 }
 0x4f3   :  { %v1344_v41 = vpop.eup %1343 }
 0x4f4   :  { %v797_v42 = vmul.f32 %v1344_v41, %v783_v16 }
 0x4f6   :  { %v803_v0 = vmul.f32 %v1101_v40, %v797_v42 }
 0x4f8   :  { %v809_v46 = vadd.f32 %v1102_v44, %v803_v0 }
 0x4fa   :  { %v810_v47 = vpack.c.bf16 %v809_v46, %v808_v45 }
 0x4fc   :  { %1219 = vmatmul.mubr.bf16.vlgmr.msra.gmra.mrb[8].mxu0 %v810_v47 }
 0x5cf   :  { %v897_v51 = vpop.f32.mrb[8].mxu0 }
 0x5d0   :  { %v898_v52 = vadd.f32 %v1103_v50, %v897_v51  ;;  %v1220_v53 = vpop.f32.mrb[9].mxu0 }
 0x5d1   :  { %v900_v54 = vpop.f32.mrb[10].mxu0 }
 0x5d2   :  { %v901_v55 = vadd.f32 %v1103_v50, %v900_v54  ;;  %v1221_v56 = vpop.f32.mrb[11].mxu0  ;;  %v904_v57 = vmax.f32 %v898_v52, 0.0 }
 0x5d4   :  { %v905_v58 = vmax.f32 %v901_v55, 0.0 }
 0x5d6   :  { %v906_v59 = vpack.c.bf16 %v905_v58, %v904_v57 }
 0x5d8   :  { %1239 = vmatmul.mubr.bf16.vlgmr.msra.gmra.mrb[20].mxu1 %v906_v59 }
 0x6ab   :  { %v993_v60 = vpop.f32.mrb[20].mxu1 }
 0x6ac   :  { %v994_v61 = vadd.f32 %v1112_v1, %v993_v60  ;;  %v1240_v62 = vpop.f32.mrb[21].mxu1 }
 0x6ad   :  { %v996_v63 = vpop.f32.mrb[22].mxu1 }
 0x6ae   :  { %v997_v2 = vadd.f32 %v1112_v1, %v996_v63  ;;  %v1241_v3 = vpop.f32.mrb[23].mxu1  ;;  %v1000_v4 = vadd.f32 %v994_v61, %v808_v45 }
 0x6b0   :  { %1002 = vadd.xlane.f32.xlu0 %v1000_v4  ;;  %v1001_v5 = vadd.f32 %v997_v2, %v809_v46 }
 0x6b2   :  { %1004 = vadd.xlane.f32.xlu1 %v1001_v5 }
 0x73d   :  { %v1003_v6 = vpop.xlane.xlu0 %1002 }
 0x73e   :  { %v1006_v7 = vmul.f32 0.0078125, %v1003_v6 }
 0x73f   :  { %v1005_v8 = vpop.xlane.xlu1 %1004 }
 0x740   :  { %v1008_v9 = vsub.f32 %v1000_v4, %v1006_v7  ;;  %v1007_v10 = vmul.f32 0.0078125, %v1005_v8 }
 0x742   :  { %v1009_v11 = vsub.f32 %v1001_v5, %v1007_v10  ;;  %v1010_v12 = vmul.f32 %v1008_v9, %v1008_v9 }
 0x744   :  { %1012 = vadd.xlane.f32.xlu0 %v1010_v12  ;;  %v1011_v13 = vmul.f32 %v1009_v11, %v1009_v11 }
 0x746   :  { %1014 = vadd.xlane.f32.xlu1 %v1011_v13 }
 0x7d1   :  { %v1013_v14 = vpop.xlane.xlu0 %1012 }
 0x7d2   :  { %v1016_v15 = vmul.f32 0.0078125, %v1013_v14 }
 0x7d3   :  { %v1015_v16 = vpop.xlane.xlu1 %1014 }
 0x7d4   :  { %v1018_v17 = vadd.f32 1e-05, %v1016_v15  ;;  %v1017_v18 = vmul.f32 0.0078125, %v1015_v16 }
 0x7d6   :  { %1345 = vrsqrt.f32 %v1018_v17  ;;  %v1019_v22 = vadd.f32 1e-05, %v1017_v18 }
 0x7d8   :  { %1347 = vrsqrt.f32 %v1019_v22 }
 0x7e0   :  { %v1346_v19 = vpop.eup %1345 }
 0x7e1   :  { %v1022_v21 = vmul.f32 %v1346_v19, %v1008_v9 }
 0x7e2   :  { %v1348_v23 = vpop.eup %1347 }
 0x7e3   :  { %v1023_v25 = vmul.f32 %v1348_v23, %v1009_v11  ;;  %v1028_v26 = vmul.f32 %v1121_v20, %v1022_v21 }
 0x7e5   :  { %v1029_v27 = vmul.f32 %v1121_v20, %v1023_v25  ;;  %v1034_v28 = vadd.f32 %v1122_v24, %v1028_v26 }
 0x7e7   :  { %v1035_v29 = vadd.f32 %v1122_v24, %v1029_v27  ;;  %1036 = vst [vmem:[#allocation12] sm:$0xff] %v1034_v28 }
 0x7e9   :  { %1037 = vst [vmem:[#allocation12 + $0x8] sm:$0xff] %v1035_v29 }
 0x7ea   :  { %1448 = shalt.err (!%p1445_p8)
}
 0x7eb   :  { %s1449_s5 = scalar_lea.hbm %s1676_s6, 256 }
 0x7ec   :  { %p1450_p9 = scmp.ne.s32.totalorder %s1676_s6, %s1449_s5  ;;  %p1453_p10 = scmp.lt.u32.totalorder %s1449_s5, %s1676_s6 }
 0x7ee   :  { %p1455_p11 = pnand %p1453_p10, %p1450_p9 }
 0x7f0   :  { %1458 = shalt.err (!%p1455_p11)
}
 0x7f1   :  { %s1481_s2 = smov 128   ;;  %s1482_s1 = smov 8  }
 0x7f2   :  { %1049 = dma.vmem_to_hbm [thread:$0]  %s1044_s13, 256, %s1676_s6, [#allocation6], %s1481_s2, %s1481_s2, %s1482_s1  }
 0x7f3   :  { %1465 = dma.done.wait [#allocation6], 256  }
 0x7f4   :  { %1466 = vsyncadd [#allocation6], 4294967040 }
 0x7f5   :  { %1053 = vsyncpa [#allocation5], 1 }
 0x7f6   :  { %1054 = vsyncpa [#allocation8], 1 }
 0x7f7   :  { %1055 = vsyncpa [#allocation11], 1 }
 0x7f8   :  { %1056 = vsyncpa [#allocation6], 1 }

</bundles_post_ra>
